<compile_context>
chip_gen: v6e
topology: v6e:2x2x1
jax: 0.10.0
libtpu: 0.0.40
codegen_flags: <defaults>
</compile_context>

<pallas_src>
import jax
import jax.numpy as jnp
from jax.experimental import pallas as pl
from jax.experimental.pallas import tpu as pltpu

STATE_SIZE = 3
ACTION_SIZE = 4
HIDDEN = 64


def qnet_kernel(x_ref, w1b1_ref, w2b2_ref, w3b3_ref, o_ref):
    x = x_ref[...]                                   # (tm, STATE_SIZE)

    # ---- fc1 on the MXU: (tm,3)@(3,64). Push cost ~tm/8 vmatmuls regardless of K;
    #      no per-feature lane/sublane broadcasts. ----
    w1 = w1b1_ref[:STATE_SIZE, :]                    # static ref slices: zero cost
    b1 = w1b1_ref[STATE_SIZE:STATE_SIZE + 1, :]      # (1, HIDDEN)
    h1 = jnp.dot(x, w1, preferred_element_type=jnp.float32) + b1
    h1 = jnp.maximum(h1, 0.0)

    # ---- fc2: 64x64 ----
    w2 = w2b2_ref[:HIDDEN, :]
    b2 = w2b2_ref[HIDDEN:HIDDEN + 1, :]              # (1, HIDDEN)
    h2 = jnp.dot(h1, w2, preferred_element_type=jnp.float32) + b2
    h2 = jnp.maximum(h2, 0.0)

    # ---- fc3: 64x4, stored unpadded. Block last dim == full array dim (4), so the
    #      (8,128) BlockSpec rule is satisfied and writeback is only 16 B/row. ----
    w3 = w3b3_ref[:HIDDEN, :]                        # (HIDDEN, ACTION_SIZE)
    b3 = w3b3_ref[HIDDEN:HIDDEN + 1, :]              # (1, ACTION_SIZE)
    o_ref[...] = jnp.dot(h2, w3, preferred_element_type=jnp.float32) + b3


def pack_params(params):
    """Pack 6 nn.Linear tensors into 3 bias-augmented slabs (bias = extra row)."""
    w1, b1, w2, b2, w3, b3 = params
    w1b1 = jnp.concatenate([w1, b1], axis=0)         # (S+1, 64)
    w2b2 = jnp.concatenate([w2, b2], axis=0)         # (65, 64)
    w3b3 = jnp.concatenate([w3, b3], axis=0)         # (65, 4)  (no lane padding)
    return w1b1, w2b2, w3b3


def _batch_axis_semantics():
    """CORE_PARALLEL on v7x (2 TensorCores/chip) so both cores split the batch
    grid axis; plain "parallel" on single-TC v5e/v6e."""
    try:
        kind = jax.devices()[0].device_kind.lower()
    except Exception:
        kind = ""
    if "v7" in kind:
        return (pltpu.CORE_PARALLEL,)
    return ("parallel",)


def qnetwork_forward(x, params, *, tm=4096):
    """x: (B, STATE_SIZE) float32 -> (B, ACTION_SIZE) float32."""
    B = x.shape[0]
    w1b1, w2b2, w3b3 = pack_params(params)

    tm_eff = B if B <= tm else tm          # full array if small, else 4096-row tiles
    grid = (pl.cdiv(B, tm_eff),)

    out = pl.pallas_call(
        qnet_kernel,
        out_shape=jax.ShapeDtypeStruct((B, ACTION_SIZE), jnp.float32),
        grid=grid,
        in_specs=[
            pl.BlockSpec((tm_eff, STATE_SIZE), lambda i: (i, 0)),           # streamed
            pl.BlockSpec((STATE_SIZE + 1, HIDDEN), lambda i: (0, 0)),       # resident
            pl.BlockSpec((HIDDEN + 1, HIDDEN), lambda i: (0, 0)),           # resident
            pl.BlockSpec((HIDDEN + 1, ACTION_SIZE), lambda i: (0, 0)),      # resident
        ],
        out_specs=pl.BlockSpec((tm_eff, ACTION_SIZE), lambda i: (i, 0)),
        compiler_params=pltpu.CompilerParams(
            dimension_semantics=_batch_axis_semantics(),
            vmem_limit_bytes=32 * 1024 * 1024,   # v5e default is 16 MiB; 32 MiB fits all gens
        ),
    )(x, w1b1, w2b2, w3b3)

    return out   # already (B, ACTION_SIZE); no wrapper slice


def init_params(key):
    """Deterministic init mirroring nn.Linear shapes.

    PyTorch Linear weight is (out, in) and computes x @ W.T + b; here we store
    the already-transposed (in, out) matrices so the kernel is x @ W + b.
    Biases are kept 2-D (1, out) so they pack as an extra weight row.
    """
    k1, k2, k3, k4, k5, k6 = jax.random.split(key, 6)

    def uinit(k, fan_in, shape):
        bound = 1.0 / jnp.sqrt(fan_in)
        return jax.random.uniform(k, shape, jnp.float32, -bound, bound)

    w1 = uinit(k1, STATE_SIZE, (STATE_SIZE, HIDDEN))
    b1 = uinit(k2, STATE_SIZE, (1, HIDDEN))
    w2 = uinit(k3, HIDDEN, (HIDDEN, HIDDEN))
    b2 = uinit(k4, HIDDEN, (1, HIDDEN))
    w3 = uinit(k5, HIDDEN, (HIDDEN, ACTION_SIZE))
    b3 = uinit(k6, HIDDEN, (1, ACTION_SIZE))
    return (w1, b1, w2, b2, w3, b3)


def reference_forward(x, params):
    w1, b1, w2, b2, w3, b3 = params
    h1 = jnp.maximum(x @ w1 + b1, 0.0)
    h2 = jnp.maximum(h1 @ w2 + b2, 0.0)
    return h2 @ w3 + b3


if __name__ == "__main__":
    key = jax.random.PRNGKey(0)
    kp, kx = jax.random.split(key)
    params = init_params(kp)

    fwd = jax.jit(qnetwork_forward)

    # Small batch (single block, tm_eff = B).
    B = 8
    x_small = jax.random.normal(kx, (B, STATE_SIZE), jnp.float32)
    out_small = jax.block_until_ready(fwd(x_small, params))
    ref_small = reference_forward(x_small, params)
    assert out_small.shape == (B, ACTION_SIZE)
    assert jnp.allclose(out_small, ref_small, atol=1e-4, rtol=1e-4)

    # Larger batch: two full 4096-row tiles, VMEM-resident weights across tiles.
    B2 = 8192
    x_big = jax.random.normal(kx, (B2, STATE_SIZE), jnp.float32)
    out_big = jax.block_until_ready(fwd(x_big, params))
    ref_big = reference_forward(x_big, params)
    assert out_big.shape == (B2, ACTION_SIZE)
    assert jnp.allclose(out_big, ref_big, atol=1e-4, rtol=1e-4)

    # Ragged batch (B % tm != 0): last block is partial; rows are independent so
    # the masked writeback keeps results correct.
    B3 = 5000
    x_rag = jax.random.normal(kx, (B3, STATE_SIZE), jnp.float32)
    out_rag = jax.block_until_ready(fwd(x_rag, params))
    ref_rag = reference_forward(x_rag, params)
    assert out_rag.shape == (B3, ACTION_SIZE)
    assert jnp.allclose(out_rag, ref_rag, atol=1e-4, rtol=1e-4)

    print("KERNEL_OK")
</pallas_src>

<mosaic_0001>
module attributes {stable_mosaic.version = 11 : i64} {
  func.func @qnet_kernel(%arg0: i32, %arg1: memref<8x3xf32, #tpu.memory_space<vmem>>, %arg2: memref<4x64xf32, #tpu.memory_space<vmem>>, %arg3: memref<65x64xf32, #tpu.memory_space<vmem>>, %arg4: memref<65x4xf32, #tpu.memory_space<vmem>>, %arg5: memref<8x4xf32, #tpu.memory_space<vmem>>) attributes {dimension_semantics = [#tpu.dimension_semantics<parallel>], iteration_bounds = array<i64: 1>, scalar_prefetch = 0 : i64, scratch_operands = 0 : i64, tpu.core_type = #tpu.core_type<tc>, window_params = [{transform_indices = @transform_0, window_bounds = array<i64: 8, 3>}, {pipeline_mode = #tpu.pipeline_mode<synchronous>, transform_indices = @transform_1, window_bounds = array<i64: 4, 64>}, {pipeline_mode = #tpu.pipeline_mode<synchronous>, transform_indices = @transform_2, window_bounds = array<i64: 65, 64>}, {pipeline_mode = #tpu.pipeline_mode<synchronous>, transform_indices = @transform_3, window_bounds = array<i64: 65, 4>}, {transform_indices = @transform_4, window_bounds = array<i64: 8, 4>}]} {
    %c0 = arith.constant 0 : index
    %c0_0 = arith.constant 0 : index
    %0 = vector.load %arg1[%c0, %c0_0] : memref<8x3xf32, #tpu.memory_space<vmem>>, vector<8x3xf32>
    %c0_1 = arith.constant 0 : index
    %c0_2 = arith.constant 0 : index
    %1 = vector.load %arg2[%c0_1, %c0_2] : memref<4x64xf32, #tpu.memory_space<vmem>>, vector<3x64xf32>
    %c3 = arith.constant 3 : index
    %c0_3 = arith.constant 0 : index
    %2 = vector.load %arg2[%c3, %c0_3] : memref<4x64xf32, #tpu.memory_space<vmem>>, vector<1x64xf32>
    %cst = arith.constant dense<0.000000e+00> : vector<8x64xf32>
    %3 = tpu.matmul %0, %1, %cst {dimension_numbers = #tpu.dot_dimension_numbers<[1], [0], [0], [1], [0, 0, 1, 1], [], []>} : vector<8x3xf32>, vector<3x64xf32>, vector<8x64xf32> -> vector<8x64xf32>
    %4 = vector.broadcast %2 : vector<1x64xf32> to vector<8x64xf32>
    %5 = arith.addf %3, %4 : vector<8x64xf32>
    %cst_4 = arith.constant 0.000000e+00 : f32
    %6 = vector.broadcast %cst_4 : f32 to vector<8x64xf32>
    %7 = arith.maximumf %5, %6 : vector<8x64xf32>
    %c0_5 = arith.constant 0 : index
    %c0_6 = arith.constant 0 : index
    %8 = vector.load %arg3[%c0_5, %c0_6] : memref<65x64xf32, #tpu.memory_space<vmem>>, vector<64x64xf32>
    %c64 = arith.constant 64 : index
    %c0_7 = arith.constant 0 : index
    %9 = vector.load %arg3[%c64, %c0_7] : memref<65x64xf32, #tpu.memory_space<vmem>>, vector<1x64xf32>
    %cst_8 = arith.constant dense<0.000000e+00> : vector<8x64xf32>
    %10 = tpu.matmul %7, %8, %cst_8 {dimension_numbers = #tpu.dot_dimension_numbers<[1], [0], [0], [1], [0, 0, 1, 1], [], []>} : vector<8x64xf32>, vector<64x64xf32>, vector<8x64xf32> -> vector<8x64xf32>
    %11 = vector.broadcast %9 : vector<1x64xf32> to vector<8x64xf32>
    %12 = arith.addf %10, %11 : vector<8x64xf32>
    %cst_9 = arith.constant 0.000000e+00 : f32
    %13 = vector.broadcast %cst_9 : f32 to vector<8x64xf32>
    %14 = arith.maximumf %12, %13 : vector<8x64xf32>
    %c0_10 = arith.constant 0 : index
    %c0_11 = arith.constant 0 : index
    %15 = vector.load %arg4[%c0_10, %c0_11] : memref<65x4xf32, #tpu.memory_space<vmem>>, vector<64x4xf32>
    %c64_12 = arith.constant 64 : index
    %c0_13 = arith.constant 0 : index
    %16 = vector.load %arg4[%c64_12, %c0_13] : memref<65x4xf32, #tpu.memory_space<vmem>>, vector<1x4xf32>
    %cst_14 = arith.constant dense<0.000000e+00> : vector<8x4xf32>
    %17 = tpu.matmul %14, %15, %cst_14 {dimension_numbers = #tpu.dot_dimension_numbers<[1], [0], [0], [1], [0, 0, 1, 1], [], []>} : vector<8x64xf32>, vector<64x4xf32>, vector<8x4xf32> -> vector<8x4xf32>
    %18 = vector.broadcast %16 : vector<1x4xf32> to vector<8x4xf32>
    %19 = arith.addf %17, %18 : vector<8x4xf32>
    %c0_15 = arith.constant 0 : index
    %c0_16 = arith.constant 0 : index
    %20 = vector.load %arg5[%c0_15, %c0_16] : memref<8x4xf32, #tpu.memory_space<vmem>>, vector<8x4xf32>
    tpu.vector_store %arg5[%c0_15, %c0_16], %19 {strides = array<i32>} : memref<8x4xf32, #tpu.memory_space<vmem>>, vector<8x4xf32>,
    return
  }
  func.func @transform_0(%arg0: i32) -> (i32, i32) {
    %c0_i32 = arith.constant 0 : i32
    %c0_i32_0 = arith.constant 0 : i32
    return %arg0, %c0_i32 : i32, i32
  }
  func.func @transform_1(%arg0: i32) -> (i32, i32) {
    %c0_i32 = arith.constant 0 : i32
    %c0_i32_0 = arith.constant 0 : i32
    %c0_i32_1 = arith.constant 0 : i32
    return %c0_i32, %c0_i32_0 : i32, i32
  }
  func.func @transform_2(%arg0: i32) -> (i32, i32) {
    %c0_i32 = arith.constant 0 : i32
    %c0_i32_0 = arith.constant 0 : i32
    %c0_i32_1 = arith.constant 0 : i32
    return %c0_i32, %c0_i32_0 : i32, i32
  }
  func.func @transform_3(%arg0: i32) -> (i32, i32) {
    %c0_i32 = arith.constant 0 : i32
    %c0_i32_0 = arith.constant 0 : i32
    %c0_i32_1 = arith.constant 0 : i32
    return %c0_i32, %c0_i32_0 : i32, i32
  }
  func.func @transform_4(%arg0: i32) -> (i32, i32) {
    %c0_i32 = arith.constant 0 : i32
    %c0_i32_0 = arith.constant 0 : i32
    return %arg0, %c0_i32 : i32, i32
  }
}

</mosaic_0001>

<bundles_post_ra>
// kernel: qnetwork_forward.1
= control target key start
LH: loop header
LB: loop body
LE: loop exit
PB: predicated region body
PF: predicated region fallthrough
CT: control target
= control target key end

     0   :  { %vm28_vm0 = vcmask 1042432   ;;  %vm24_vm1 = vcmask 23552   ;;  %v355_v0 = vmov 0.0   ;;  %vm356_vm2 = vmmov 0   ;;  %s453_s1 = inlined_call_operand.vmem [shape: f32[4,64], index: 1, kind: input, shape index: {}]   ;;  %s454_s0 = inlined_call_operand.vmem [shape: f32[8,3], index: 0, kind: input, shape index: {}]   ;;  %s455_s2 = inlined_call_operand.vmem [shape: f32[65,64], index: 2, kind: input, shape index: {}]   ;;  %s456_s3 = inlined_call_operand.vmem [shape: f32[65,4], index: 3, kind: input, shape index: {}]   ;;  %s457_s4 = inlined_call_operand.vmem [shape: f32[8,4], index: 4, kind: output, shape index: {}]  }
   0x1   :  { %310 = vmatprep.subr.mxu0 %v355_v0  ;;  %v18_v1 = vld [vmem:[%s453_s1] sm:$0x7]  ;;  %312 = vmatprep.mubr.msk.f32.mxu0 %vm356_vm2, %v355_v0  ;;  %v110_v3 = vld [vmem:[%s455_s2 + $0x38] sm:$0xff]  ;;  %v109_v4 = vld [vmem:[%s455_s2 + $0x30] sm:$0xff]  ;;  %vm116_vm3 = vcmask 523264   ;;  %vm277_vm4 = vcmask 31744  }
   0x2   :  { %v17_v2 = vld [vmem:[%s454_s0] sm:$0xff]  ;;  %311 = vmatpush3.msk.msra.mxu0 %vm28_vm0, %v18_v1  ;;  %315 = vmatprep.subr.mxu1 %v355_v0  ;;  %v108_v5 = vld [vmem:[%s455_s2 + $0x28] sm:$0xff]  ;;  %v106_v7 = vld [vmem:[%s455_s2 + $0x18] sm:$0xff] }
   0x3   :  { %313 = vmatmul.mubr.msk.f32.vlgmr.msra.gmra.mxu0 %vm24_vm1, %v17_v2  ;;  %316 = vmatpush3.msra.mxu1 %v110_v3  ;;  %v107_v6 = vld [vmem:[%s455_s2 + $0x20] sm:$0xff]  ;;  %v105_v8 = vld [vmem:[%s455_s2 + $0x10] sm:$0xff]  ;;  %v104_v9 = vld [vmem:[%s455_s2 + $0x8] sm:$0xff] }
   0x4   :  { %317 = vmatprep.subr.mxu1 %v355_v0  ;;  %331 = vmatprep.mubr.msk.f32.mxu1 %vm356_vm2, %v355_v0  ;;  %v103_v10 = vld [vmem:[%s455_s2] sm:$0xff]  ;;  %v198_v11 = vld [vmem:[%s456_s3 + $0x38] sm:$0xff]  ;;  %v197_v12 = vld [vmem:[%s456_s3 + $0x30] sm:$0xff] }
   0x5   :  { %318 = vmatpush3.msra.mxu1 %v109_v4  ;;  %334 = vmatprep.subr.mxu0 %v355_v0  ;;  %v196_v13 = vld [vmem:[%s456_s3 + $0x28] sm:$0xff]  ;;  %v195_v14 = vld [vmem:[%s456_s3 + $0x20] sm:$0xff]  ;;  %v194_v15 = vld [vmem:[%s456_s3 + $0x18] sm:$0xff] }
   0x6   :  { %319 = vmatprep.subr.mxu1 %v355_v0  ;;  %350 = vmatprep.mubr.msk.f32.mxu0 %vm356_vm2, %v355_v0  ;;  %v283_v16 = vld [vmem:[%s453_s1 + $0x3] ss:$0 sm:$0xff]  ;;  %v193_v21 = vld [vmem:[%s456_s3 + $0x10] sm:$0xff]  ;;  %v192_v22 = vld [vmem:[%s456_s3 + $0x8] sm:$0xff] }
   0x7   :  { %320 = vmatpush3.msra.mxu1 %v108_v5  ;;  %335 = vmatpush3.msra.mxu0 %v198_v11  ;;  %v191_v23 = vld [vmem:[%s456_s3] sm:$0xff] }
   0x8   :  { %321 = vmatprep.subr.mxu1 %v355_v0  ;;  %336 = vmatprep.subr.mxu0 %v355_v0  ;;  %v286_v24 = vld [vmem:[%s455_s2 + $0x40] ss:$0 sm:$0xff] }
   0x9   :  { %322 = vmatpush3.msra.mxu1 %v107_v6  ;;  %337 = vmatpush3.msra.mxu0 %v197_v12  ;;  %v288_v29 = vld [vmem:[%s456_s3 + $0x40] ss:$0 sm:$0xff] }
   0xa   :  { %323 = vmatprep.subr.mxu1 %v355_v0  ;;  %338 = vmatprep.subr.mxu0 %v355_v0 }
   0xb   :  { %324 = vmatpush3.msra.mxu1 %v106_v7  ;;  %339 = vmatpush3.msra.mxu0 %v196_v13 }
   0xc   :  { %325 = vmatprep.subr.mxu1 %v355_v0  ;;  %340 = vmatprep.subr.mxu0 %v355_v0 }
   0xd   :  { %326 = vmatpush3.msra.mxu1 %v105_v8  ;;  %341 = vmatpush3.msra.mxu0 %v195_v14 }
   0xe   :  { %327 = vmatprep.subr.mxu1 %v355_v0  ;;  %342 = vmatprep.subr.mxu0 %v355_v0 }
   0xf   :  { %328 = vmatpush3.msra.mxu1 %v104_v9  ;;  %343 = vmatpush3.msra.mxu0 %v194_v15 }
  0x10   :  { %329 = vmatprep.subr.mxu1 %v355_v0  ;;  %344 = vmatprep.subr.mxu0 %v355_v0 }
  0x11   :  { %330 = vmatpush3.msra.mxu1 %v103_v10  ;;  %345 = vmatpush3.msra.mxu0 %v193_v21 }
  0x12   :  { %346 = vmatprep.subr.mxu0 %v355_v0 }
  0x13   :  { %347 = vmatpush3.msra.mxu0 %v192_v22 }
  0x14   :  { %348 = vmatprep.subr.mxu0 %v355_v0 }
  0x15   :  { %349 = vmatpush3.msra.mxu0 %v191_v23 }
  0xc3   :  { %v98_v17 = vpop.f32.mrf.mxu0 }
  0xc4   :  { %v99_v18 = vadd.f32 %v283_v16, %v98_v17 }
  0xc5   :  { %v314_v19 = vpop.f32.mrf.mxu0 }
  0xc6   :  { %v102_v20 = vmax.f32 %v99_v18, 0.0 }
  0xc8   :  { %332 = vmatmul.mubr.msk.f32.vlgmr.msra.gmra.mxu1 %vm116_vm3, %v102_v20 }
 0x188   :  { %v186_v25 = vpop.f32.mrf.mxu1 }
 0x189   :  { %v187_v26 = vadd.f32 %v286_v24, %v186_v25 }
 0x18a   :  { %v333_v27 = vpop.f32.mrf.mxu1 }
 0x18b   :  { %v190_v28 = vmax.f32 %v187_v26, 0.0 }
 0x18d   :  { %351 = vmatmul.mubr.msk.f32.vlgmr.msra.gmra.mxu0 %vm116_vm3, %v190_v28 }
 0x24d   :  { %v273_v30 = vpop.f32.mrf.mxu0 }
 0x24e   :  { %v274_v31 = vadd.f32 %v288_v29, %v273_v30 }
 0x24f   :  { %v352_v32 = vpop.f32.mrf.mxu0 }
 0x250   :  { %278 = vst.msk [vmem:[%s457_s4] sm:$0xff] %vm277_vm4, %v274_v31 }

</bundles_post_ra>
